<compile_context>
chip_gen: v6e
topology: v6e:2x2x1
jax: 0.10.0
libtpu: 0.0.40
codegen_flags: <defaults>
</compile_context>

<pallas_src>
import functools

import jax
import jax.numpy as jnp
from jax.experimental import pallas as pl
from jax.experimental.pallas import tpu as pltpu


_LANE = 128        # lane (last-dim) tile
_MAX_TB = 512      # max batch-tile rows (review: 512 reaches ~85% of HBM roofline)


def _round_up(n, m):
    return ((n + m - 1) // m) * m


# ---------------------------------------------------------------------------
# Fused decoder kernel: every Linear + activation layer in a single kernel.
# ---------------------------------------------------------------------------
def _decoder_kernel(x_ref, *refs, activations):
    n_layers = len(activations)
    o_ref = refs[2 * n_layers]
    compute_dtype = x_ref.dtype

    h = x_ref[...]
    y = h
    for i in range(n_layers):
        wt = refs[2 * i][...]          # [in_pad, out_pad] storage dtype (f32 or bf16)
        b = refs[2 * i + 1][...]       # [1, out_pad] f32 (softmax pad cols = -1e30)
        # MXU matmul in storage dtype, f32 accumulation; all activation math in f32.
        y = jnp.dot(h, wt, preferred_element_type=jnp.float32) + b

        act = activations[i]
        if act == "relu":
            y = jnp.maximum(y, 0.0)
        elif act == "leaky_relu":
            y = jnp.where(y >= 0.0, y, 0.01 * y)   # nn.LeakyReLU default slope
        elif act == "sigmoid":
            y = jax.nn.sigmoid(y)
        elif act == "tanh":
            y = jnp.tanh(y)
        elif act == "identity":
            pass
        elif act == "softmax":
            # PyTorch nn.Softmax(dim=1). Padded columns already carry bias -1e30
            # (set at prepare time), so exp underflows to 0 — no in-kernel mask.
            m = jnp.max(y, axis=-1, keepdims=True)
            e = jnp.exp(y - m)
            d = jnp.sum(e, axis=-1, keepdims=True)
            r = pl.reciprocal(d, approx=True)      # EUP slot
            r = r * (2.0 - d * r)                  # one Newton step -> near-exact
            y = e * r
        else:
            raise ValueError(f"unknown activation: {act}")

        if i + 1 < n_layers:
            h = y.astype(compute_dtype)            # stays resident; no HBM trip

    o_ref[...] = y.astype(o_ref.dtype)


# ---------------------------------------------------------------------------
# Parameter construction / one-time layout preparation.
# ---------------------------------------------------------------------------
def init_decoder_params(key, latent_dim, hidden_dim, output_dim):
    """Mimics PyTorch nn.Linear default init: U(-1/sqrt(fan_in), 1/sqrt(fan_in)).
    Returns PyTorch-layout params: w [out_f, in_f], b [out_f]."""
    dims = [latent_dim] + list(hidden_dim) + [output_dim]
    params = []
    for i in range(len(dims) - 1):
        in_f, out_f = dims[i], dims[i + 1]
        key, kw, kb = jax.random.split(key, 3)
        bound = 1.0 / jnp.sqrt(jnp.float32(in_f))
        w = jax.random.uniform(kw, (out_f, in_f), jnp.float32, -bound, bound)
        b = jax.random.uniform(kb, (out_f,), jnp.float32, -bound, bound)
        params.append((w, b))
    return params


def prepare_decoder_params(params, activation_list, dtype=jnp.float32):
    """ONE-TIME layout prep (not per forward call):
      * transpose [out_f, in_f] -> [in_f, out_f] and cast to the storage dtype
        (f32 or bf16);
      * pad output feature dims to multiples of 128 (lane-dense stores);
      * first layer's contraction dim padded only to the sublane pack (16 covers
        f32 and bf16), later layers match the previous layer's padded width;
      * biases kept in f32; for softmax layers the PADDED bias entries are set to
        -1e30 so no masking is needed inside the kernel.
    """
    assert len(params) == len(activation_list)
    prepared = []
    for i, (w, b) in enumerate(params):
        out_f, in_f = w.shape
        in_pad = _round_up(in_f, 16) if i == 0 else _round_up(in_f, _LANE)
        out_pad = _round_up(out_f, _LANE)
        wt = jnp.zeros((in_pad, out_pad), dtype).at[:in_f, :out_f].set(
            jnp.transpose(w).astype(dtype))
        bp = jnp.zeros((1, out_pad), jnp.float32).at[0, :out_f].set(
            b.astype(jnp.float32))
        if activation_list[i] == "softmax" and out_pad > out_f:
            bp = bp.at[0, out_f:].set(-1e30)
        prepared.append((wt, bp, in_f, out_f))
    return prepared


def _vmem_limit_bytes(tb, in_pad0, out_pad_last, prepared_params,
                      act_itemsize, out_itemsize):
    """Compute a VMEM budget from the actual footprint, clamped for v7x (64 MiB)."""
    fp = 2 * tb * in_pad0 * act_itemsize           # double-buffered input tile
    fp += 2 * tb * out_pad_last * out_itemsize     # double-buffered output tile
    for wt, bp, _, _ in prepared_params:           # weights/biases (assume 2 bufs)
        fp += 2 * (wt.size * wt.dtype.itemsize + bp.size * bp.dtype.itemsize)
    max_feat = max([in_pad0] + [wt.shape[1] for wt, _, _, _ in prepared_params])
    fp += 4 * tb * max_feat * 4                    # live f32 intermediates + margin
    return int(min(max(2 * fp, 32 * 1024 * 1024), 48 * 1024 * 1024))


# ---------------------------------------------------------------------------
# Forward pass: single fused pallas_call over a batch-tiled "parallel" grid.
# ---------------------------------------------------------------------------
def decoder_forward(prepared_params, activation_list, x, *, small_threshold=16384):
    assert len(prepared_params) == len(activation_list)
    B, in_f0 = x.shape

    in_pad0 = prepared_params[0][0].shape[0]
    out_f_last = prepared_params[-1][3]
    out_pad_last = prepared_params[-1][0].shape[1]

    # Small-problem fast path: launch + pad/slice overhead dominates; let XLA fuse.
    max_dim = max([in_pad0] + [p[0].shape[1] for p in prepared_params])
    if B * max_dim < small_threshold:
        return _decoder_small_path(prepared_params, activation_list, x)

    cdt = prepared_params[0][0].dtype              # storage/compute dtype (f32|bf16)
    sub = 8 if jnp.dtype(cdt).itemsize == 4 else 16  # sublane pack for that dtype

    # Batch tiling: big tiles (<=512 rows) amortize per-step overhead; guarantee
    # >=2 grid steps when the batch allows so both v7x TensorCores get work.
    b_pad = _round_up(B, sub)
    tb = min(_MAX_TB, b_pad)
    if pl.cdiv(b_pad, tb) < 2 and b_pad >= 2 * sub:
        tb = _round_up((b_pad + 1) // 2, sub)
    b_pad = _round_up(b_pad, tb)

    x_c = x.astype(cdt)
    pad_b, pad_f = b_pad - B, in_pad0 - in_f0
    if pad_b or pad_f:
        x_c = jnp.pad(x_c, ((0, pad_b), (0, pad_f)))

    operands = [x_c]
    for wt, bp, _, _ in prepared_params:
        operands += [wt, bp]

    kernel = functools.partial(_decoder_kernel, activations=tuple(activation_list))
    vmem_limit = _vmem_limit_bytes(tb, in_pad0, out_pad_last, prepared_params,
                                   jnp.dtype(cdt).itemsize,
                                   jnp.dtype(x.dtype).itemsize)

    def _call(weight_mode):
        kw = {} if weight_mode is None else {"pipeline_mode": weight_mode}
        in_specs = [pl.BlockSpec((tb, in_pad0), lambda i: (i, 0))]
        for wt, bp, _, _ in prepared_params:
            in_specs.append(pl.BlockSpec(wt.shape, lambda i: (0, 0), **kw))
            in_specs.append(pl.BlockSpec(bp.shape, lambda i: (0, 0), **kw))
        return pl.pallas_call(
            kernel,
            out_shape=jax.ShapeDtypeStruct((b_pad, out_pad_last), x.dtype),
            grid=(b_pad // tb,),
            in_specs=in_specs,
            out_specs=pl.BlockSpec((tb, out_pad_last), lambda i: (i, 0)),
            compiler_params=pltpu.CompilerParams(
                dimension_semantics=("parallel",),
                vmem_limit_bytes=vmem_limit,
            ),
        )(*operands)

    # Weight/bias blocks never change across the batch grid -> single-buffer them
    # (halves their VMEM). Fall back to default double-buffering if unsupported.
    buffered = getattr(pl, "Buffered", None)
    if buffered is not None:
        try:
            y_pad = _call(buffered(1))
        except Exception:
            y_pad = _call(None)
    else:
        y_pad = _call(None)

    return y_pad[:B, :out_f_last]


def _decoder_small_path(prepared_params, activation_list, x):
    """Pure-JAX path for tiny problems (same prepared params, same semantics)."""
    out_f_last = prepared_params[-1][3]
    h = x.astype(jnp.float32)
    for (wt, bp, _, _), act in zip(prepared_params, activation_list):
        w_use = wt[: h.shape[1], :]
        y = jnp.dot(h.astype(wt.dtype), w_use,
                    preferred_element_type=jnp.float32) + bp
        if act == "relu":
            h = jnp.maximum(y, 0.0)
        elif act == "leaky_relu":
            h = jnp.where(y >= 0.0, y, 0.01 * y)
        elif act == "sigmoid":
            h = jax.nn.sigmoid(y)
        elif act == "tanh":
            h = jnp.tanh(y)
        elif act == "identity":
            h = y
        elif act == "softmax":
            h = jax.nn.softmax(y, axis=1)   # padded cols carry -1e30 bias -> 0
        else:
            raise ValueError(f"unknown activation: {act}")
    return h[:, :out_f_last].astype(x.dtype)


# Pure-JAX reference (PyTorch semantics) for correctness checking.
def decoder_forward_ref(params, activation_list, x):
    acts = {
        "relu": lambda v: jnp.maximum(v, 0.0),
        "sigmoid": jax.nn.sigmoid,
        "tanh": jnp.tanh,
        "identity": lambda v: v,
        "softmax": lambda v: jax.nn.softmax(v, axis=1),
        "leaky_relu": lambda v: jnp.where(v >= 0.0, v, 0.01 * v),
    }
    for (w, b), act in zip(params, activation_list):
        x = acts[act](x @ w.T + b)
    return x


if __name__ == "__main__":
    key = jax.random.PRNGKey(0)

    batch = 4
    latent_dim = 16
    hidden_dim = [32, 64]
    output_dim = 16

    kx, kp, kx2 = jax.random.split(key, 3)
    x = jax.random.normal(kx, (batch, latent_dim), jnp.float32)
    params = init_decoder_params(kp, latent_dim, hidden_dim, output_dim)

    acts1 = ["relu", "tanh", "sigmoid"]
    acts2 = ["leaky_relu", "softmax", "identity"]

    prep1 = prepare_decoder_params(params, acts1, dtype=jnp.float32)
    prep2 = prepare_decoder_params(params, acts2, dtype=jnp.float32)

    # Config 1: f32, standard activations (tight tolerance). small_threshold=0
    # forces the Pallas kernel path even at this tiny size.
    out1 = jax.block_until_ready(decoder_forward(prep1, acts1, x, small_threshold=0))
    ref1 = decoder_forward_ref(params, acts1, x)
    assert out1.shape == (batch, output_dim)
    assert jnp.allclose(out1, ref1, atol=1e-5, rtol=1e-5), "mismatch (config 1)"

    # Config 2: softmax mid-stack (pad cols masked via -1e30 bias; Newton-refined
    # EUP reciprocal in the denominator).
    out2 = jax.block_until_ready(decoder_forward(prep2, acts2, x, small_threshold=0))
    ref2 = decoder_forward_ref(params, acts2, x)
    assert jnp.allclose(out2, ref2, atol=1e-4, rtol=1e-4), "mismatch (config 2)"

    # Config 3: larger batch -> >=2-step "parallel" grid (both v7x TCs busy).
    xb = jax.random.normal(kx2, (200, latent_dim), jnp.float32)
    out3 = jax.block_until_ready(decoder_forward(prep1, acts1, xb, small_threshold=0))
    ref3 = decoder_forward_ref(params, acts1, xb)
    assert out3.shape == (200, output_dim)
    assert jnp.allclose(out3, ref3, atol=1e-5, rtol=1e-5), "mismatch (config 3)"

    # Config 4: bf16 weight/activation storage (halves DMA + VMEM), f32 accumulation;
    # looser tolerance per bf16 precision.
    prep_bf16 = prepare_decoder_params(params, acts1, dtype=jnp.bfloat16)
    out4 = jax.block_until_ready(
        decoder_forward(prep_bf16, acts1, xb, small_threshold=0))
    assert jnp.allclose(out4, ref3, atol=5e-2, rtol=5e-2), "mismatch (config 4, bf16)"

    # Config 5: small-problem fast path (default threshold) -> pure-JAX, no launch.
    out5 = jax.block_until_ready(decoder_forward(prep1, acts1, x))
    assert jnp.allclose(out5, ref1, atol=1e-5, rtol=1e-5), "mismatch (config 5)"

    print("KERNEL_OK")
</pallas_src>

<mosaic_0001>
module attributes {stable_mosaic.version = 11 : i64} {
  func.func @_decoder_kernel(%arg0: i32, %arg1: memref<8x16xf32, #tpu.memory_space<vmem>>, %arg2: memref<16x128xf32, #tpu.memory_space<vmem>>, %arg3: memref<1x128xf32, #tpu.memory_space<vmem>>, %arg4: memref<128x128xf32, #tpu.memory_space<vmem>>, %arg5: memref<1x128xf32, #tpu.memory_space<vmem>>, %arg6: memref<128x128xf32, #tpu.memory_space<vmem>>, %arg7: memref<1x128xf32, #tpu.memory_space<vmem>>, %arg8: memref<8x128xf32, #tpu.memory_space<vmem>>) attributes {dimension_semantics = [#tpu.dimension_semantics<parallel>], iteration_bounds = array<i64: 1>, scalar_prefetch = 0 : i64, scratch_operands = 0 : i64, tpu.core_type = #tpu.core_type<tc>, window_params = [{transform_indices = @transform_0, window_bounds = array<i64: 8, 16>}, {pipeline_mode = #tpu.pipeline_mode<synchronous>, transform_indices = @transform_1, window_bounds = array<i64: 16, 128>}, {pipeline_mode = #tpu.pipeline_mode<synchronous>, transform_indices = @transform_2, window_bounds = array<i64: 1, 128>}, {pipeline_mode = #tpu.pipeline_mode<synchronous>, transform_indices = @transform_3, window_bounds = array<i64: 128, 128>}, {pipeline_mode = #tpu.pipeline_mode<synchronous>, transform_indices = @transform_4, window_bounds = array<i64: 1, 128>}, {pipeline_mode = #tpu.pipeline_mode<synchronous>, transform_indices = @transform_5, window_bounds = array<i64: 128, 128>}, {pipeline_mode = #tpu.pipeline_mode<synchronous>, transform_indices = @transform_6, window_bounds = array<i64: 1, 128>}, {transform_indices = @transform_7, window_bounds = array<i64: 8, 128>}]} {
    %c0 = arith.constant 0 : index
    %c0_0 = arith.constant 0 : index
    %0 = vector.load %arg1[%c0, %c0_0] : memref<8x16xf32, #tpu.memory_space<vmem>>, vector<8x16xf32>
    %c0_1 = arith.constant 0 : index
    %c0_2 = arith.constant 0 : index
    %1 = vector.load %arg2[%c0_1, %c0_2] : memref<16x128xf32, #tpu.memory_space<vmem>>, vector<16x128xf32>
    %c0_3 = arith.constant 0 : index
    %c0_4 = arith.constant 0 : index
    %2 = vector.load %arg3[%c0_3, %c0_4] : memref<1x128xf32, #tpu.memory_space<vmem>>, vector<1x128xf32>
    %cst = arith.constant dense<0.000000e+00> : vector<8x128xf32>
    %3 = tpu.matmul %0, %1, %cst {dimension_numbers = #tpu.dot_dimension_numbers<[1], [0], [0], [1], [0, 0, 1, 1], [], []>} : vector<8x16xf32>, vector<16x128xf32>, vector<8x128xf32> -> vector<8x128xf32>
    %4 = vector.broadcast %2 : vector<1x128xf32> to vector<8x128xf32>
    %5 = arith.addf %3, %4 : vector<8x128xf32>
    %cst_5 = arith.constant 0.000000e+00 : f32
    %6 = vector.broadcast %cst_5 : f32 to vector<8x128xf32>
    %7 = arith.maximumf %5, %6 : vector<8x128xf32>
    %c0_6 = arith.constant 0 : index
    %c0_7 = arith.constant 0 : index
    %8 = vector.load %arg4[%c0_6, %c0_7] : memref<128x128xf32, #tpu.memory_space<vmem>>, vector<128x128xf32>
    %c0_8 = arith.constant 0 : index
    %c0_9 = arith.constant 0 : index
    %9 = vector.load %arg5[%c0_8, %c0_9] : memref<1x128xf32, #tpu.memory_space<vmem>>, vector<1x128xf32>
    %cst_10 = arith.constant dense<0.000000e+00> : vector<8x128xf32>
    %10 = tpu.matmul %7, %8, %cst_10 {dimension_numbers = #tpu.dot_dimension_numbers<[1], [0], [0], [1], [0, 0, 1, 1], [], []>} : vector<8x128xf32>, vector<128x128xf32>, vector<8x128xf32> -> vector<8x128xf32>
    %11 = vector.broadcast %9 : vector<1x128xf32> to vector<8x128xf32>
    %12 = arith.addf %10, %11 : vector<8x128xf32>
    %13 = math.tanh %12 : vector<8x128xf32>
    %c0_11 = arith.constant 0 : index
    %c0_12 = arith.constant 0 : index
    %14 = vector.load %arg6[%c0_11, %c0_12] : memref<128x128xf32, #tpu.memory_space<vmem>>, vector<128x128xf32>
    %c0_13 = arith.constant 0 : index
    %c0_14 = arith.constant 0 : index
    %15 = vector.load %arg7[%c0_13, %c0_14] : memref<1x128xf32, #tpu.memory_space<vmem>>, vector<1x128xf32>
    %cst_15 = arith.constant dense<0.000000e+00> : vector<8x128xf32>
    %16 = tpu.matmul %13, %14, %cst_15 {dimension_numbers = #tpu.dot_dimension_numbers<[1], [0], [0], [1], [0, 0, 1, 1], [], []>} : vector<8x128xf32>, vector<128x128xf32>, vector<8x128xf32> -> vector<8x128xf32>
    %17 = vector.broadcast %15 : vector<1x128xf32> to vector<8x128xf32>
    %18 = arith.addf %16, %17 : vector<8x128xf32>
    %19 = arith.negf %18 : vector<8x128xf32>
    %20 = math.exp %19 : vector<8x128xf32>
    %cst_16 = arith.constant 1.000000e+00 : f32
    %21 = vector.broadcast %cst_16 : f32 to vector<8x128xf32>
    %22 = arith.addf %21, %20 : vector<8x128xf32>
    %23 = arith.divf %21, %22 : vector<8x128xf32>
    %c0_17 = arith.constant 0 : index
    %c0_18 = arith.constant 0 : index
    %24 = vector.load %arg8[%c0_17, %c0_18] : memref<8x128xf32, #tpu.memory_space<vmem>>, vector<8x128xf32>
    tpu.vector_store %arg8[%c0_17, %c0_18], %23 {strides = array<i32>} : memref<8x128xf32, #tpu.memory_space<vmem>>, vector<8x128xf32>,
    return
  }
  func.func @transform_0(%arg0: i32) -> (i32, i32) {
    %c0_i32 = arith.constant 0 : i32
    %c0_i32_0 = arith.constant 0 : i32
    return %arg0, %c0_i32 : i32, i32
  }
  func.func @transform_1(%arg0: i32) -> (i32, i32) {
    %c0_i32 = arith.constant 0 : i32
    %c0_i32_0 = arith.constant 0 : i32
    %c0_i32_1 = arith.constant 0 : i32
    return %c0_i32, %c0_i32_0 : i32, i32
  }
  func.func @transform_2(%arg0: i32) -> (i32, i32) {
    %c0_i32 = arith.constant 0 : i32
    %c0_i32_0 = arith.constant 0 : i32
    %c0_i32_1 = arith.constant 0 : i32
    return %c0_i32, %c0_i32_0 : i32, i32
  }
  func.func @transform_3(%arg0: i32) -> (i32, i32) {
    %c0_i32 = arith.constant 0 : i32
    %c0_i32_0 = arith.constant 0 : i32
    %c0_i32_1 = arith.constant 0 : i32
    return %c0_i32, %c0_i32_0 : i32, i32
  }
  func.func @transform_4(%arg0: i32) -> (i32, i32) {
    %c0_i32 = arith.constant 0 : i32
    %c0_i32_0 = arith.constant 0 : i32
    %c0_i32_1 = arith.constant 0 : i32
    return %c0_i32, %c0_i32_0 : i32, i32
  }
  func.func @transform_5(%arg0: i32) -> (i32, i32) {
    %c0_i32 = arith.constant 0 : i32
    %c0_i32_0 = arith.constant 0 : i32
    %c0_i32_1 = arith.constant 0 : i32
    return %c0_i32, %c0_i32_0 : i32, i32
  }
  func.func @transform_6(%arg0: i32) -> (i32, i32) {
    %c0_i32 = arith.constant 0 : i32
    %c0_i32_0 = arith.constant 0 : i32
    %c0_i32_1 = arith.constant 0 : i32
    return %c0_i32, %c0_i32_0 : i32, i32
  }
  func.func @transform_7(%arg0: i32) -> (i32, i32) {
    %c0_i32 = arith.constant 0 : i32
    %c0_i32_0 = arith.constant 0 : i32
    return %arg0, %c0_i32 : i32, i32
  }
}

module attributes {stable_mosaic.version = 11 : i64} {
  func.func @_decoder_kernel(%arg0: i32, %arg1: memref<8x16xf32, #tpu.memory_space<vmem>>, %arg2: memref<16x128xf32, #tpu.memory_space<vmem>>, %arg3: memref<1x128xf32, #tpu.memory_space<vmem>>, %arg4: memref<128x128xf32, #tpu.memory_space<vmem>>, %arg5: memref<1x128xf32, #tpu.memory_space<vmem>>, %arg6: memref<128x128xf32, #tpu.memory_space<vmem>>, %arg7: memref<1x128xf32, #tpu.memory_space<vmem>>, %arg8: memref<8x128xf32, #tpu.memory_space<vmem>>) attributes {dimension_semantics = [#tpu.dimension_semantics<parallel>], iteration_bounds = array<i64: 1>, scalar_prefetch = 0 : i64, scratch_operands = 0 : i64, tpu.core_type = #tpu.core_type<tc>, window_params = [{transform_indices = @transform_0, window_bounds = array<i64: 8, 16>}, {pipeline_mode = #tpu.pipeline_mode<synchronous>, transform_indices = @transform_1, window_bounds = array<i64: 16, 128>}, {pipeline_mode = #tpu.pipeline_mode<synchronous>, transform_indices = @transform_2, window_bounds = array<i64: 1, 128>}, {pipeline_mode = #tpu.pipeline_mode<synchronous>, transform_indices = @transform_3, window_bounds = array<i64: 128, 128>}, {pipeline_mode = #tpu.pipeline_mode<synchronous>, transform_indices = @transform_4, window_bounds = array<i64: 1, 128>}, {pipeline_mode = #tpu.pipeline_mode<synchronous>, transform_indices = @transform_5, window_bounds = array<i64: 128, 128>}, {pipeline_mode = #tpu.pipeline_mode<synchronous>, transform_indices = @transform_6, window_bounds = array<i64: 1, 128>}, {transform_indices = @transform_7, window_bounds = array<i64: 8, 128>}]} {
    %c0 = arith.constant 0 : index
    %c0_0 = arith.constant 0 : index
    %0 = vector.load %arg1[%c0, %c0_0] : memref<8x16xf32, #tpu.memory_space<vmem>>, vector<8x16xf32>
    %c0_1 = arith.constant 0 : index
    %c0_2 = arith.constant 0 : index
    %1 = vector.load %arg2[%c0_1, %c0_2] : memref<16x128xf32, #tpu.memory_space<vmem>>, vector<16x128xf32>
    %c0_3 = arith.constant 0 : index
    %c0_4 = arith.constant 0 : index
    %2 = vector.load %arg3[%c0_3, %c0_4] : memref<1x128xf32, #tpu.memory_space<vmem>>, vector<1x128xf32>
    %cst = arith.constant dense<0.000000e+00> : vector<8x128xf32>
    %3 = tpu.matmul %0, %1, %cst {dimension_numbers = #tpu.dot_dimension_numbers<[1], [0], [0], [1], [0, 0, 1, 1], [], []>} : vector<8x16xf32>, vector<16x128xf32>, vector<8x128xf32> -> vector<8x128xf32>
    %4 = vector.broadcast %2 : vector<1x128xf32> to vector<8x128xf32>
    %5 = arith.addf %3, %4 : vector<8x128xf32>
    %cst_5 = arith.constant 0.000000e+00 : f32
    %6 = vector.broadcast %cst_5 : f32 to vector<8x128xf32>
    %7 = arith.maximumf %5, %6 : vector<8x128xf32>
    %c0_6 = arith.constant 0 : index
    %c0_7 = arith.constant 0 : index
    %8 = vector.load %arg4[%c0_6, %c0_7] : memref<128x128xf32, #tpu.memory_space<vmem>>, vector<128x128xf32>
    %c0_8 = arith.constant 0 : index
    %c0_9 = arith.constant 0 : index
    %9 = vector.load %arg5[%c0_8, %c0_9] : memref<1x128xf32, #tpu.memory_space<vmem>>, vector<1x128xf32>
    %cst_10 = arith.constant dense<0.000000e+00> : vector<8x128xf32>
    %10 = tpu.matmul %7, %8, %cst_10 {dimension_numbers = #tpu.dot_dimension_numbers<[1], [0], [0], [1], [0, 0, 1, 1], [], []>} : vector<8x128xf32>, vector<128x128xf32>, vector<8x128xf32> -> vector<8x128xf32>
    %11 = vector.broadcast %9 : vector<1x128xf32> to vector<8x128xf32>
    %12 = arith.addf %10, %11 : vector<8x128xf32>
    %13 = math.tanh %12 : vector<8x128xf32>
    %c0_11 = arith.constant 0 : index
    %c0_12 = arith.constant 0 : index
    %14 = vector.load %arg6[%c0_11, %c0_12] : memref<128x128xf32, #tpu.memory_space<vmem>>, vector<128x128xf32>
    %c0_13 = arith.constant 0 : index
    %c0_14 = arith.constant 0 : index
    %15 = vector.load %arg7[%c0_13, %c0_14] : memref<1x128xf32, #tpu.memory_space<vmem>>, vector<1x128xf32>
    %cst_15 = arith.constant dense<0.000000e+00> : vector<8x128xf32>
    %16 = tpu.matmul %13, %14, %cst_15 {dimension_numbers = #tpu.dot_dimension_numbers<[1], [0], [0], [1], [0, 0, 1, 1], [], []>} : vector<8x128xf32>, vector<128x128xf32>, vector<8x128xf32> -> vector<8x128xf32>
    %17 = vector.broadcast %15 : vector<1x128xf32> to vector<8x128xf32>
    %18 = arith.addf %16, %17 : vector<8x128xf32>
    %19 = arith.negf %18 : vector<8x128xf32>
    %20 = math.exp %19 : vector<8x128xf32>
    %cst_16 = arith.constant 1.000000e+00 : f32
    %21 = vector.broadcast %cst_16 : f32 to vector<8x128xf32>
    %22 = arith.addf %21, %20 : vector<8x128xf32>
    %23 = arith.divf %21, %22 : vector<8x128xf32>
    %c0_17 = arith.constant 0 : index
    %c0_18 = arith.constant 0 : index
    %24 = vector.load %arg8[%c0_17, %c0_18] : memref<8x128xf32, #tpu.memory_space<vmem>>, vector<8x128xf32>
    tpu.vector_store %arg8[%c0_17, %c0_18], %23 {strides = array<i32>} : memref<8x128xf32, #tpu.memory_space<vmem>>, vector<8x128xf32>,
    return
  }
  func.func @transform_0(%arg0: i32) -> (i32, i32) {
    %c0_i32 = arith.constant 0 : i32
    %c0_i32_0 = arith.constant 0 : i32
    return %arg0, %c0_i32 : i32, i32
  }
  func.func @transform_1(%arg0: i32) -> (i32, i32) {
    %c0_i32 = arith.constant 0 : i32
    %c0_i32_0 = arith.constant 0 : i32
    %c0_i32_1 = arith.constant 0 : i32
    return %c0_i32, %c0_i32_0 : i32, i32
  }
  func.func @transform_2(%arg0: i32) -> (i32, i32) {
    %c0_i32 = arith.constant 0 : i32
    %c0_i32_0 = arith.constant 0 : i32
    %c0_i32_1 = arith.constant 0 : i32
    return %c0_i32, %c0_i32_0 : i32, i32
  }
  func.func @transform_3(%arg0: i32) -> (i32, i32) {
    %c0_i32 = arith.constant 0 : i32
    %c0_i32_0 = arith.constant 0 : i32
    %c0_i32_1 = arith.constant 0 : i32
    return %c0_i32, %c0_i32_0 : i32, i32
  }
  func.func @transform_4(%arg0: i32) -> (i32, i32) {
    %c0_i32 = arith.constant 0 : i32
    %c0_i32_0 = arith.constant 0 : i32
    %c0_i32_1 = arith.constant 0 : i32
    return %c0_i32, %c0_i32_0 : i32, i32
  }
  func.func @transform_5(%arg0: i32) -> (i32, i32) {
    %c0_i32 = arith.constant 0 : i32
    %c0_i32_0 = arith.constant 0 : i32
    %c0_i32_1 = arith.constant 0 : i32
    return %c0_i32, %c0_i32_0 : i32, i32
  }
  func.func @transform_6(%arg0: i32) -> (i32, i32) {
    %c0_i32 = arith.constant 0 : i32
    %c0_i32_0 = arith.constant 0 : i32
    %c0_i32_1 = arith.constant 0 : i32
    return %c0_i32, %c0_i32_0 : i32, i32
  }
  func.func @transform_7(%arg0: i32) -> (i32, i32) {
    %c0_i32 = arith.constant 0 : i32
    %c0_i32_0 = arith.constant 0 : i32
    return %arg0, %c0_i32 : i32, i32
  }
}

</mosaic_0001>

<bundles_post_ra>
// kernel: tpu_custom_call.1
= control target key start
LH: loop header
LB: loop body
LE: loop exit
PB: predicated region body
PF: predicated region fallthrough
CT: control target
= control target key end

     0   :  { %12 = vsyncpa [#allocation3], 0  ;;  %s740_s0 = inlined_call_operand.hbm [shape: f32[8,16], index: 0, kind: input, shape index: {}]   ;;  %s741_s1 = inlined_call_operand.hbm [shape: f32[16,128], index: 1, kind: input, shape index: {}]   ;;  %s742_s2 = inlined_call_operand.vmem [shape: f32[1,128], index: 2, kind: input, shape index: {}]   ;;  %s743_s3 = inlined_call_operand.hbm [shape: f32[128,128], index: 3, kind: input, shape index: {}]   ;;  %s744_s4 = inlined_call_operand.vmem [shape: f32[1,128], index: 4, kind: input, shape index: {}]   ;;  %s745_s5 = inlined_call_operand.hbm [shape: f32[128,128], index: 5, kind: input, shape index: {}]   ;;  %s746_s6 = inlined_call_operand.vmem [shape: f32[1,128], index: 6, kind: input, shape index: {}]   ;;  %s747_s7 = inlined_call_operand.hbm [shape: f32[8,128], index: 7, kind: output, shape index: {}]  }
   0x1   :  { %13 = vsyncpa [#allocation6], 0 }
   0x2   :  { %14 = vsyncpa [#allocation9], 0 }
   0x3   :  { %15 = vsyncpa [#allocation4], 0  ;;  %s618_s24 = smov [#allocation5]  }
   0x4   :  { %s31_s25 = sshll.u32 %s618_s24, 4  ;;  %s32_s25 = int_to_ptr.vmem [resolvable:$true] %s31_s25 }
   0x5   :  { %s518_s26 = scalar_lea.vmem %s32_s25, 256  ;;  %p523_p1 = scmp.lt.s32.totalorder %s32_s25, %s32_s25 }
   0x6   :  { %p519_p0 = scmp.ne.s32.totalorder %s32_s25, %s518_s26  ;;  %p524_p2 = scmp.lt.s32.totalorder %s518_s26, %s518_s26 }
   0x8   :  { %p525_p3 = por %p524_p2, %p523_p1 }
   0xa   :  { %p526_p4 = pnand %p525_p3, %p519_p0 }
   0xc   :  { %529 = shalt.err (!%p526_p4)
}
   0xd   :  { %s619_s27 = smov 128   ;;  %s620_s28 = smov 8  }
   0xe   :  { %37 = dma.hbm_to_vmem [thread:$0]  %s741_s1, 256, %s32_s25, [#allocation6], %s619_s27, %s619_s27, %s620_s28  }
   0xf   :  { %s621_s8 = smov [#allocation2]   ;;  %s622_s10 = smov [#allocation7]  }
  0x10   :  { %s22_s9 = sshll.u32 %s621_s8, 4  ;;  %s45_s11 = sshll.u32 %s622_s10, 4  ;;  %s23_s9 = int_to_ptr.vmem [resolvable:$true] %s22_s9  ;;  %s46_s11 = int_to_ptr.vmem [resolvable:$true] %s45_s11 }
  0x11   :  { %s538_s12 = scalar_lea.vmem %s23_s9, 128  ;;  %p543_p6 = scmp.lt.s32.totalorder %s23_s9, %s23_s9 }
  0x12   :  { %p539_p5 = scmp.ne.s32.totalorder %s23_s9, %s538_s12  ;;  %p544_p7 = scmp.lt.s32.totalorder %s538_s12, %s538_s12 }
  0x14   :  { %p545_p8 = por %p544_p7, %p543_p6 }
  0x16   :  { %p546_p9 = pnand %p545_p8, %p539_p5 }
  0x18   :  { %549 = shalt.err (!%p546_p9)
}
  0x19   :  { %25 = dma.hbm_to_vmem [thread:$0]  %s740_s0, 128, %s23_s9, [#allocation3]  }
  0x1a   :  { %s558_s15 = scalar_lea.vmem %s46_s11, 2048  ;;  %p563_p11 = scmp.lt.s32.totalorder %s46_s11, %s46_s11 }
  0x1b   :  { %p559_p10 = scmp.ne.s32.totalorder %s46_s11, %s558_s15  ;;  %p564_p12 = scmp.lt.s32.totalorder %s558_s15, %s558_s15 }
  0x1d   :  { %p565_p13 = por %p564_p12, %p563_p11 }
  0x1f   :  { %p566_p0 = pnand %p565_p13, %p559_p10 }
  0x21   :  { %569 = shalt.err (!%p566_p0)
}
  0x22   :  { %51 = dma.hbm_to_vmem [thread:$0]  %s743_s3, 2048, %s46_s11, [#allocation6], %s619_s27, %s619_s27, %s620_s28  }
  0x23   :  { %s623_s17 = smov [#allocation8]  }
  0x24   :  { %s59_s18 = sshll.u32 %s623_s17, 4  ;;  %s60_s18 = int_to_ptr.vmem [resolvable:$true] %s59_s18 }
  0x25   :  { %s578_s19 = scalar_lea.vmem %s60_s18, 2048  ;;  %p583_p2 = scmp.lt.s32.totalorder %s60_s18, %s60_s18 }
  0x26   :  { %p579_p1 = scmp.ne.s32.totalorder %s60_s18, %s578_s19  ;;  %p584_p3 = scmp.lt.s32.totalorder %s578_s19, %s578_s19 }
  0x28   :  { %p585_p4 = por %p584_p3, %p583_p2 }
  0x2a   :  { %p586_p5 = pnand %p585_p4, %p579_p1 }
  0x2c   :  { %589 = shalt.err (!%p586_p5)
}
  0x2d   :  { %65 = dma.hbm_to_vmem [thread:$0]  %s745_s5, 2048, %s60_s18, [#allocation9], %s619_s27, %s619_s27, %s620_s28  }
  0x2e   :  { %610 = dma.done.wait [#allocation3], 128  }
  0x2f   :  { %611 = vsyncadd [#allocation3], 4294967168 }
  0x30   :  { %612 = dma.done.wait [#allocation6], 2304  }
  0x31   :  { %613 = vsyncadd [#allocation6], 4294964992 }
  0x32   :  { %614 = dma.done.wait [#allocation9], 2048  }
  0x33   :  { %615 = vsyncadd [#allocation9], 4294965248  ;;  %v624_v0 = vmov 0.0   ;;  %vm625_vm0 = vmmov 0   ;;  %v82_v1 = vld [vmem:[#allocation5 + $0x8] sm:$0xff]  ;;  %v81_v2 = vld [vmem:[#allocation5] sm:$0xff] }
  0x34   :  { %418 = vmatprep.subr.mxu0 %v624_v0  ;;  %422 = vmatprep.mubr.msk.f32.mxu0 %vm625_vm0, %v624_v0  ;;  %v80_v3 = vld [vmem:[#allocation2] sm:$0xff]  ;;  %vm90_vm1 = vcmask 130048   ;;  %v180_v4 = vld [vmem:[#allocation7 + $0x78] sm:$0xff]  ;;  %v179_v5 = vld [vmem:[#allocation7 + $0x70] sm:$0xff]  ;;  %s626_s24 = smov [#allocation10]  }
  0x35   :  { %425 = vmatprep.subr.mxu1 %v624_v0  ;;  %457 = vmatprep.mubr.msk.f32.mxu1 %vm625_vm0, %v624_v0  ;;  %v178_v6 = vld [vmem:[#allocation7 + $0x68] sm:$0xff]  ;;  %v177_v7 = vld [vmem:[#allocation7 + $0x60] sm:$0xff]  ;;  %v176_v8 = vld [vmem:[#allocation7 + $0x58] sm:$0xff] }
  0x36   :  { %419 = vmatpush3.msra.mxu0 %v82_v1  ;;  %426 = vmatpush3.msra.mxu1 %v180_v4  ;;  %v175_v9 = vld [vmem:[#allocation7 + $0x50] sm:$0xff]  ;;  %v174_v10 = vld [vmem:[#allocation7 + $0x48] sm:$0xff]  ;;  %v173_v11 = vld [vmem:[#allocation7 + $0x40] sm:$0xff] }
  0x37   :  { %420 = vmatprep.subr.mxu0 %v624_v0  ;;  %427 = vmatprep.subr.mxu1 %v624_v0  ;;  %v172_v12 = vld [vmem:[#allocation7 + $0x38] sm:$0xff]  ;;  %v171_v13 = vld [vmem:[#allocation7 + $0x30] sm:$0xff]  ;;  %v170_v14 = vld [vmem:[#allocation7 + $0x28] sm:$0xff] }
  0x38   :  { %421 = vmatpush3.msra.mxu0 %v81_v2  ;;  %428 = vmatpush3.msra.mxu1 %v179_v5  ;;  %v169_v15 = vld [vmem:[#allocation7 + $0x20] sm:$0xff]  ;;  %v168_v16 = vld [vmem:[#allocation7 + $0x18] sm:$0xff]  ;;  %v167_v17 = vld [vmem:[#allocation7 + $0x10] sm:$0xff] }
  0x39   :  { %423 = vmatmul.mubr.msk.f32.vlgmr.msra.gmra.mxu0 %vm90_vm1, %v80_v3  ;;  %429 = vmatprep.subr.mxu1 %v624_v0  ;;  %v166_v18 = vld [vmem:[#allocation7 + $0x8] sm:$0xff]  ;;  %v165_v19 = vld [vmem:[#allocation7] sm:$0xff]  ;;  %v274_v20 = vld [vmem:[#allocation8 + $0x78] sm:$0xff] }
  0x3a   :  { %460 = vmatprep.subr.mxu0 %v624_v0  ;;  %430 = vmatpush3.msra.mxu1 %v178_v6  ;;  %v273_v21 = vld [vmem:[#allocation8 + $0x70] sm:$0xff]  ;;  %v272_v22 = vld [vmem:[#allocation8 + $0x68] sm:$0xff]  ;;  %v271_v23 = vld [vmem:[#allocation8 + $0x60] sm:$0xff] }
  0x3b   :  { %492 = vmatprep.mubr.msk.f32.mxu0 %vm625_vm0, %v624_v0  ;;  %431 = vmatprep.subr.mxu1 %v624_v0  ;;  %v270_v24 = vld [vmem:[#allocation8 + $0x58] sm:$0xff]  ;;  %v269_v25 = vld [vmem:[#allocation8 + $0x50] sm:$0xff]  ;;  %v268_v26 = vld [vmem:[#allocation8 + $0x48] sm:$0xff] }
  0x3c   :  { %432 = vmatpush3.msra.mxu1 %v177_v7  ;;  %461 = vmatpush3.msra.mxu0 %v274_v20  ;;  %v376_v27 = vld [vmem:[%s742_s2] ss:$0 sm:$0xff]  ;;  %v267_v32 = vld [vmem:[#allocation8 + $0x40] sm:$0xff]  ;;  %v266_v33 = vld [vmem:[#allocation8 + $0x38] sm:$0xff] }
  0x3d   :  { %433 = vmatprep.subr.mxu1 %v624_v0  ;;  %462 = vmatprep.subr.mxu0 %v624_v0  ;;  %v265_v34 = vld [vmem:[#allocation8 + $0x30] sm:$0xff]  ;;  %v264_v35 = vld [vmem:[#allocation8 + $0x28] sm:$0xff]  ;;  %v263_v36 = vld [vmem:[#allocation8 + $0x20] sm:$0xff] }
  0x3e   :  { %434 = vmatpush3.msra.mxu1 %v176_v8  ;;  %463 = vmatpush3.msra.mxu0 %v273_v21  ;;  %v262_v37 = vld [vmem:[#allocation8 + $0x18] sm:$0xff]  ;;  %v261_v38 = vld [vmem:[#allocation8 + $0x10] sm:$0xff]  ;;  %v260_v39 = vld [vmem:[#allocation8 + $0x8] sm:$0xff] }
  0x3f   :  { %435 = vmatprep.subr.mxu1 %v624_v0  ;;  %464 = vmatprep.subr.mxu0 %v624_v0  ;;  %v259_v40 = vld [vmem:[#allocation8] sm:$0xff]  ;;  %v378_v41 = vld [vmem:[%s744_s4] ss:$0 sm:$0xff]  ;;  %s365_s4 = sshll.u32 %s626_s24, 4  ;;  %s366_s4 = int_to_ptr.vmem [resolvable:$true] %s365_s4 }
  0x40   :  { %436 = vmatpush3.msra.mxu1 %v175_v9  ;;  %465 = vmatpush3.msra.mxu0 %v272_v22  ;;  %v379_v46 = vld [vmem:[%s746_s6] ss:$0 sm:$0xff]  ;;  %s590_s25 = scalar_lea.vmem %s366_s4, 128  ;;  %p595_p7 = scmp.lt.s32.totalorder %s366_s4, %s366_s4 }
  0x41   :  { %437 = vmatprep.subr.mxu1 %v624_v0  ;;  %466 = vmatprep.subr.mxu0 %v624_v0  ;;  %p591_p6 = scmp.ne.s32.totalorder %s366_s4, %s590_s25  ;;  %p596_p8 = scmp.lt.s32.totalorder %s590_s25, %s590_s25 }
  0x42   :  { %438 = vmatpush3.msra.mxu1 %v174_v10  ;;  %467 = vmatpush3.msra.mxu0 %v271_v23 }
  0x43   :  { %439 = vmatprep.subr.mxu1 %v624_v0  ;;  %468 = vmatprep.subr.mxu0 %v624_v0  ;;  %p597_p9 = por %p596_p8, %p595_p7 }
  0x44   :  { %440 = vmatpush3.msra.mxu1 %v173_v11  ;;  %469 = vmatpush3.msra.mxu0 %v270_v24 }
  0x45   :  { %441 = vmatprep.subr.mxu1 %v624_v0  ;;  %470 = vmatprep.subr.mxu0 %v624_v0  ;;  %p598_p10 = pnand %p597_p9, %p591_p6 }
  0x46   :  { %442 = vmatpush3.msra.mxu1 %v172_v12  ;;  %471 = vmatpush3.msra.mxu0 %v269_v25 }
  0x47   :  { %443 = vmatprep.subr.mxu1 %v624_v0  ;;  %472 = vmatprep.subr.mxu0 %v624_v0 }
  0x48   :  { %444 = vmatpush3.msra.mxu1 %v171_v13  ;;  %473 = vmatpush3.msra.mxu0 %v268_v26 }
  0x49   :  { %445 = vmatprep.subr.mxu1 %v624_v0  ;;  %474 = vmatprep.subr.mxu0 %v624_v0 }
  0x4a   :  { %446 = vmatpush3.msra.mxu1 %v170_v14  ;;  %475 = vmatpush3.msra.mxu0 %v267_v32 }
  0x4b   :  { %447 = vmatprep.subr.mxu1 %v624_v0  ;;  %476 = vmatprep.subr.mxu0 %v624_v0 }
  0x4c   :  { %448 = vmatpush3.msra.mxu1 %v169_v15  ;;  %477 = vmatpush3.msra.mxu0 %v266_v33 }
  0x4d   :  { %449 = vmatprep.subr.mxu1 %v624_v0  ;;  %478 = vmatprep.subr.mxu0 %v624_v0 }
  0x4e   :  { %450 = vmatpush3.msra.mxu1 %v168_v16  ;;  %479 = vmatpush3.msra.mxu0 %v265_v34 }
  0x4f   :  { %451 = vmatprep.subr.mxu1 %v624_v0  ;;  %480 = vmatprep.subr.mxu0 %v624_v0 }
  0x50   :  { %452 = vmatpush3.msra.mxu1 %v167_v17  ;;  %481 = vmatpush3.msra.mxu0 %v264_v35 }
  0x51   :  { %453 = vmatprep.subr.mxu1 %v624_v0  ;;  %482 = vmatprep.subr.mxu0 %v624_v0 }
  0x52   :  { %454 = vmatpush3.msra.mxu1 %v166_v18  ;;  %483 = vmatpush3.msra.mxu0 %v263_v36 }
  0x53   :  { %455 = vmatprep.subr.mxu1 %v624_v0  ;;  %484 = vmatprep.subr.mxu0 %v624_v0 }
  0x54   :  { %456 = vmatpush3.msra.mxu1 %v165_v19  ;;  %485 = vmatpush3.msra.mxu0 %v262_v37 }
  0x55   :  { %486 = vmatprep.subr.mxu0 %v624_v0 }
  0x56   :  { %487 = vmatpush3.msra.mxu0 %v261_v38 }
  0x57   :  { %488 = vmatprep.subr.mxu0 %v624_v0 }
  0x58   :  { %489 = vmatpush3.msra.mxu0 %v260_v39 }
  0x59   :  { %490 = vmatprep.subr.mxu0 %v624_v0 }
  0x5a   :  { %491 = vmatpush3.msra.mxu0 %v259_v40 }
  0xf9   :  { %v160_v28 = vpop.f32.mrf.mxu0 }
  0xfa   :  { %v161_v29 = vadd.f32 %v376_v27, %v160_v28 }
  0xfb   :  { %v424_v30 = vpop.f32.mrf.mxu0 }
  0xfc   :  { %v164_v31 = vmax.f32 %v161_v29, 0.0 }
  0xfe   :  { %458 = vmatmul.mubr.f32.vlgmr.msra.gmra.mxu1 %v164_v31 }
 0x1be   :  { %v254_v42 = vpop.f32.mrf.mxu1 }
 0x1bf   :  { %v255_v43 = vadd.f32 %v378_v41, %v254_v42 }
 0x1c0   :  { %v459_v44 = vpop.f32.mrf.mxu1 }
 0x1c1   :  { %504 = vtanh.f32 %v255_v43 }
 0x1ce   :  { %v505_v45 = vpop.eup %504 }
 0x1cf   :  { %493 = vmatmul.mubr.f32.vlgmr.msra.gmra.mxu0 %v505_v45 }
 0x28f   :  { %v348_v47 = vpop.f32.mrf.mxu0 }
 0x290   :  { %v349_v48 = vadd.f32 %v379_v46, %v348_v47 }
 0x291   :  { %v494_v49 = vpop.f32.mrf.mxu0 }
 0x292   :  { %v380_v50 = vmul.f32 -1.442695, %v349_v48 }
 0x294   :  { %506 = vpow2.f32 %v380_v50 }
 0x2a1   :  { %v507_v51 = vpop.eup %506 }
 0x2a2   :  { %v355_v52 = vadd.f32 1.0, %v507_v51 }
 0x2a4   :  { %508 = vrcp.f32 %v355_v52 }
 0x2b1   :  { %v509_v53 = vpop.eup %508 }
 0x2b2   :  { %358 = vst [vmem:[#allocation10] sm:$0xff] %v509_v53 }
 0x2b3   :  { %601 = shalt.err (!%p598_p10)
}
 0x2b4   :  { %368 = dma.vmem_to_hbm [thread:$0]  %s366_s4, 128, %s747_s7, [#allocation4]  }
 0x2b5   :  { %616 = dma.done.wait [#allocation4], 128  }
 0x2b6   :  { %617 = vsyncadd [#allocation4], 4294967168 }
 0x2b7   :  { %372 = vsyncpa [#allocation3], 1 }
 0x2b8   :  { %373 = vsyncpa [#allocation6], 1 }
 0x2b9   :  { %374 = vsyncpa [#allocation9], 1 }
 0x2ba   :  { %375 = vsyncpa [#allocation4], 1 }

// kernel: tpu_custom_call.1
= control target key start
LH: loop header
LB: loop body
LE: loop exit
PB: predicated region body
PF: predicated region fallthrough
CT: control target
= control target key end

     0   :  { %12 = vsyncpa [#allocation3], 0  ;;  %s740_s0 = inlined_call_operand.hbm [shape: f32[8,16], index: 0, kind: input, shape index: {}]   ;;  %s741_s1 = inlined_call_operand.hbm [shape: f32[16,128], index: 1, kind: input, shape index: {}]   ;;  %s742_s2 = inlined_call_operand.vmem [shape: f32[1,128], index: 2, kind: input, shape index: {}]   ;;  %s743_s3 = inlined_call_operand.hbm [shape: f32[128,128], index: 3, kind: input, shape index: {}]   ;;  %s744_s4 = inlined_call_operand.vmem [shape: f32[1,128], index: 4, kind: input, shape index: {}]   ;;  %s745_s5 = inlined_call_operand.hbm [shape: f32[128,128], index: 5, kind: input, shape index: {}]   ;;  %s746_s6 = inlined_call_operand.vmem [shape: f32[1,128], index: 6, kind: input, shape index: {}]   ;;  %s747_s7 = inlined_call_operand.hbm [shape: f32[8,128], index: 7, kind: output, shape index: {}]  }
   0x1   :  { %13 = vsyncpa [#allocation6], 0 }
   0x2   :  { %14 = vsyncpa [#allocation9], 0 }
   0x3   :  { %15 = vsyncpa [#allocation4], 0  ;;  %s618_s24 = smov [#allocation5]  }
   0x4   :  { %s31_s25 = sshll.u32 %s618_s24, 4  ;;  %s32_s25 = int_to_ptr.vmem [resolvable:$true] %s31_s25 }
   0x5   :  { %s518_s26 = scalar_lea.vmem %s32_s25, 256  ;;  %p523_p1 = scmp.lt.s32.totalorder %s32_s25, %s32_s25 }
   0x6   :  { %p519_p0 = scmp.ne.s32.totalorder %s32_s25, %s518_s26  ;;  %p524_p2 = scmp.lt.s32.totalorder %s518_s26, %s518_s26 }
   0x8   :  { %p525_p3 = por %p524_p2, %p523_p1 }
   0xa   :  { %p526_p4 = pnand %p525_p3, %p519_p0 }
   0xc   :  { %529 = shalt.err (!%p526_p4)
}
   0xd   :  { %s619_s27 = smov 128   ;;  %s620_s28 = smov 8  }
   0xe   :  { %37 = dma.hbm_to_vmem [thread:$0]  %s741_s1, 256, %s32_s25, [#allocation6], %s619_s27, %s619_s27, %s620_s28  }
   0xf   :  { %s621_s8 = smov [#allocation2]   ;;  %s622_s10 = smov [#allocation7]  }
  0x10   :  { %s22_s9 = sshll.u32 %s621_s8, 4  ;;  %s45_s11 = sshll.u32 %s622_s10, 4  ;;  %s23_s9 = int_to_ptr.vmem [resolvable:$true] %s22_s9  ;;  %s46_s11 = int_to_ptr.vmem [resolvable:$true] %s45_s11 }
  0x11   :  { %s538_s12 = scalar_lea.vmem %s23_s9, 128  ;;  %p543_p6 = scmp.lt.s32.totalorder %s23_s9, %s23_s9 }
  0x12   :  { %p539_p5 = scmp.ne.s32.totalorder %s23_s9, %s538_s12  ;;  %p544_p7 = scmp.lt.s32.totalorder %s538_s12, %s538_s12 }
  0x14   :  { %p545_p8 = por %p544_p7, %p543_p6 }
  0x16   :  { %p546_p9 = pnand %p545_p8, %p539_p5 }
  0x18   :  { %549 = shalt.err (!%p546_p9)
}
  0x19   :  { %25 = dma.hbm_to_vmem [thread:$0]  %s740_s0, 128, %s23_s9, [#allocation3]  }
  0x1a   :  { %s558_s15 = scalar_lea.vmem %s46_s11, 2048  ;;  %p563_p11 = scmp.lt.s32.totalorder %s46_s11, %s46_s11 }
  0x1b   :  { %p559_p10 = scmp.ne.s32.totalorder %s46_s11, %s558_s15  ;;  %p564_p12 = scmp.lt.s32.totalorder %s558_s15, %s558_s15 }
  0x1d   :  { %p565_p13 = por %p564_p12, %p563_p11 }
  0x1f   :  { %p566_p0 = pnand %p565_p13, %p559_p10 }
  0x21   :  { %569 = shalt.err (!%p566_p0)
}
  0x22   :  { %51 = dma.hbm_to_vmem [thread:$0]  %s743_s3, 2048, %s46_s11, [#allocation6], %s619_s27, %s619_s27, %s620_s28  }
  0x23   :  { %s623_s17 = smov [#allocation8]  }
  0x24   :  { %s59_s18 = sshll.u32 %s623_s17, 4  ;;  %s60_s18 = int_to_ptr.vmem [resolvable:$true] %s59_s18 }
  0x25   :  { %s578_s19 = scalar_lea.vmem %s60_s18, 2048  ;;  %p583_p2 = scmp.lt.s32.totalorder %s60_s18, %s60_s18 }
  0x26   :  { %p579_p1 = scmp.ne.s32.totalorder %s60_s18, %s578_s19  ;;  %p584_p3 = scmp.lt.s32.totalorder %s578_s19, %s578_s19 }
  0x28   :  { %p585_p4 = por %p584_p3, %p583_p2 }
  0x2a   :  { %p586_p5 = pnand %p585_p4, %p579_p1 }
  0x2c   :  { %589 = shalt.err (!%p586_p5)
}
  0x2d   :  { %65 = dma.hbm_to_vmem [thread:$0]  %s745_s5, 2048, %s60_s18, [#allocation9], %s619_s27, %s619_s27, %s620_s28  }
  0x2e   :  { %610 = dma.done.wait [#allocation3], 128  }
  0x2f   :  { %611 = vsyncadd [#allocation3], 4294967168 }
  0x30   :  { %612 = dma.done.wait [#allocation6], 2304  }
  0x31   :  { %613 = vsyncadd [#allocation6], 4294964992 }
  0x32   :  { %614 = dma.done.wait [#allocation9], 2048  }
  0x33   :  { %615 = vsyncadd [#allocation9], 4294965248  ;;  %v624_v0 = vmov 0.0   ;;  %vm625_vm0 = vmmov 0   ;;  %v82_v1 = vld [vmem:[#allocation5 + $0x8] sm:$0xff]  ;;  %v81_v2 = vld [vmem:[#allocation5] sm:$0xff] }
  0x34   :  { %418 = vmatprep.subr.mxu0 %v624_v0  ;;  %422 = vmatprep.mubr.msk.f32.mxu0 %vm625_vm0, %v624_v0  ;;  %v80_v3 = vld [vmem:[#allocation2] sm:$0xff]  ;;  %vm90_vm1 = vcmask 130048   ;;  %v180_v4 = vld [vmem:[#allocation7 + $0x78] sm:$0xff]  ;;  %v179_v5 = vld [vmem:[#allocation7 + $0x70] sm:$0xff]  ;;  %s626_s24 = smov [#allocation10]  }
  0x35   :  { %425 = vmatprep.subr.mxu1 %v624_v0  ;;  %457 = vmatprep.mubr.msk.f32.mxu1 %vm625_vm0, %v624_v0  ;;  %v178_v6 = vld [vmem:[#allocation7 + $0x68] sm:$0xff]  ;;  %v177_v7 = vld [vmem:[#allocation7 + $0x60] sm:$0xff]  ;;  %v176_v8 = vld [vmem:[#allocation7 + $0x58] sm:$0xff] }
  0x36   :  { %419 = vmatpush3.msra.mxu0 %v82_v1  ;;  %426 = vmatpush3.msra.mxu1 %v180_v4  ;;  %v175_v9 = vld [vmem:[#allocation7 + $0x50] sm:$0xff]  ;;  %v174_v10 = vld [vmem:[#allocation7 + $0x48] sm:$0xff]  ;;  %v173_v11 = vld [vmem:[#allocation7 + $0x40] sm:$0xff] }
  0x37   :  { %420 = vmatprep.subr.mxu0 %v624_v0  ;;  %427 = vmatprep.subr.mxu1 %v624_v0  ;;  %v172_v12 = vld [vmem:[#allocation7 + $0x38] sm:$0xff]  ;;  %v171_v13 = vld [vmem:[#allocation7 + $0x30] sm:$0xff]  ;;  %v170_v14 = vld [vmem:[#allocation7 + $0x28] sm:$0xff] }
  0x38   :  { %421 = vmatpush3.msra.mxu0 %v81_v2  ;;  %428 = vmatpush3.msra.mxu1 %v179_v5  ;;  %v169_v15 = vld [vmem:[#allocation7 + $0x20] sm:$0xff]  ;;  %v168_v16 = vld [vmem:[#allocation7 + $0x18] sm:$0xff]  ;;  %v167_v17 = vld [vmem:[#allocation7 + $0x10] sm:$0xff] }
  0x39   :  { %423 = vmatmul.mubr.msk.f32.vlgmr.msra.gmra.mxu0 %vm90_vm1, %v80_v3  ;;  %429 = vmatprep.subr.mxu1 %v624_v0  ;;  %v166_v18 = vld [vmem:[#allocation7 + $0x8] sm:$0xff]  ;;  %v165_v19 = vld [vmem:[#allocation7] sm:$0xff]  ;;  %v274_v20 = vld [vmem:[#allocation8 + $0x78] sm:$0xff] }
  0x3a   :  { %460 = vmatprep.subr.mxu0 %v624_v0  ;;  %430 = vmatpush3.msra.mxu1 %v178_v6  ;;  %v273_v21 = vld [vmem:[#allocation8 + $0x70] sm:$0xff]  ;;  %v272_v22 = vld [vmem:[#allocation8 + $0x68] sm:$0xff]  ;;  %v271_v23 = vld [vmem:[#allocation8 + $0x60] sm:$0xff] }
  0x3b   :  { %492 = vmatprep.mubr.msk.f32.mxu0 %vm625_vm0, %v624_v0  ;;  %431 = vmatprep.subr.mxu1 %v624_v0  ;;  %v270_v24 = vld [vmem:[#allocation8 + $0x58] sm:$0xff]  ;;  %v269_v25 = vld [vmem:[#allocation8 + $0x50] sm:$0xff]  ;;  %v268_v26 = vld [vmem:[#allocation8 + $0x48] sm:$0xff] }
  0x3c   :  { %432 = vmatpush3.msra.mxu1 %v177_v7  ;;  %461 = vmatpush3.msra.mxu0 %v274_v20  ;;  %v376_v27 = vld [vmem:[%s742_s2] ss:$0 sm:$0xff]  ;;  %v267_v32 = vld [vmem:[#allocation8 + $0x40] sm:$0xff]  ;;  %v266_v33 = vld [vmem:[#allocation8 + $0x38] sm:$0xff] }
  0x3d   :  { %433 = vmatprep.subr.mxu1 %v624_v0  ;;  %462 = vmatprep.subr.mxu0 %v624_v0  ;;  %v265_v34 = vld [vmem:[#allocation8 + $0x30] sm:$0xff]  ;;  %v264_v35 = vld [vmem:[#allocation8 + $0x28] sm:$0xff]  ;;  %v263_v36 = vld [vmem:[#allocation8 + $0x20] sm:$0xff] }
  0x3e   :  { %434 = vmatpush3.msra.mxu1 %v176_v8  ;;  %463 = vmatpush3.msra.mxu0 %v273_v21  ;;  %v262_v37 = vld [vmem:[#allocation8 + $0x18] sm:$0xff]  ;;  %v261_v38 = vld [vmem:[#allocation8 + $0x10] sm:$0xff]  ;;  %v260_v39 = vld [vmem:[#allocation8 + $0x8] sm:$0xff] }
  0x3f   :  { %435 = vmatprep.subr.mxu1 %v624_v0  ;;  %464 = vmatprep.subr.mxu0 %v624_v0  ;;  %v259_v40 = vld [vmem:[#allocation8] sm:$0xff]  ;;  %v378_v41 = vld [vmem:[%s744_s4] ss:$0 sm:$0xff]  ;;  %s365_s4 = sshll.u32 %s626_s24, 4  ;;  %s366_s4 = int_to_ptr.vmem [resolvable:$true] %s365_s4 }
  0x40   :  { %436 = vmatpush3.msra.mxu1 %v175_v9  ;;  %465 = vmatpush3.msra.mxu0 %v272_v22  ;;  %v379_v46 = vld [vmem:[%s746_s6] ss:$0 sm:$0xff]  ;;  %s590_s25 = scalar_lea.vmem %s366_s4, 128  ;;  %p595_p7 = scmp.lt.s32.totalorder %s366_s4, %s366_s4 }
  0x41   :  { %437 = vmatprep.subr.mxu1 %v624_v0  ;;  %466 = vmatprep.subr.mxu0 %v624_v0  ;;  %p591_p6 = scmp.ne.s32.totalorder %s366_s4, %s590_s25  ;;  %p596_p8 = scmp.lt.s32.totalorder %s590_s25, %s590_s25 }
  0x42   :  { %438 = vmatpush3.msra.mxu1 %v174_v10  ;;  %467 = vmatpush3.msra.mxu0 %v271_v23 }
  0x43   :  { %439 = vmatprep.subr.mxu1 %v624_v0  ;;  %468 = vmatprep.subr.mxu0 %v624_v0  ;;  %p597_p9 = por %p596_p8, %p595_p7 }
  0x44   :  { %440 = vmatpush3.msra.mxu1 %v173_v11  ;;  %469 = vmatpush3.msra.mxu0 %v270_v24 }
  0x45   :  { %441 = vmatprep.subr.mxu1 %v624_v0  ;;  %470 = vmatprep.subr.mxu0 %v624_v0  ;;  %p598_p10 = pnand %p597_p9, %p591_p6 }
  0x46   :  { %442 = vmatpush3.msra.mxu1 %v172_v12  ;;  %471 = vmatpush3.msra.mxu0 %v269_v25 }
  0x47   :  { %443 = vmatprep.subr.mxu1 %v624_v0  ;;  %472 = vmatprep.subr.mxu0 %v624_v0 }
  0x48   :  { %444 = vmatpush3.msra.mxu1 %v171_v13  ;;  %473 = vmatpush3.msra.mxu0 %v268_v26 }
  0x49   :  { %445 = vmatprep.subr.mxu1 %v624_v0  ;;  %474 = vmatprep.subr.mxu0 %v624_v0 }
  0x4a   :  { %446 = vmatpush3.msra.mxu1 %v170_v14  ;;  %475 = vmatpush3.msra.mxu0 %v267_v32 }
  0x4b   :  { %447 = vmatprep.subr.mxu1 %v624_v0  ;;  %476 = vmatprep.subr.mxu0 %v624_v0 }
  0x4c   :  { %448 = vmatpush3.msra.mxu1 %v169_v15  ;;  %477 = vmatpush3.msra.mxu0 %v266_v33 }
  0x4d   :  { %449 = vmatprep.subr.mxu1 %v624_v0  ;;  %478 = vmatprep.subr.mxu0 %v624_v0 }
  0x4e   :  { %450 = vmatpush3.msra.mxu1 %v168_v16  ;;  %479 = vmatpush3.msra.mxu0 %v265_v34 }
  0x4f   :  { %451 = vmatprep.subr.mxu1 %v624_v0  ;;  %480 = vmatprep.subr.mxu0 %v624_v0 }
  0x50   :  { %452 = vmatpush3.msra.mxu1 %v167_v17  ;;  %481 = vmatpush3.msra.mxu0 %v264_v35 }
  0x51   :  { %453 = vmatprep.subr.mxu1 %v624_v0  ;;  %482 = vmatprep.subr.mxu0 %v624_v0 }
  0x52   :  { %454 = vmatpush3.msra.mxu1 %v166_v18  ;;  %483 = vmatpush3.msra.mxu0 %v263_v36 }
  0x53   :  { %455 = vmatprep.subr.mxu1 %v624_v0  ;;  %484 = vmatprep.subr.mxu0 %v624_v0 }
  0x54   :  { %456 = vmatpush3.msra.mxu1 %v165_v19  ;;  %485 = vmatpush3.msra.mxu0 %v262_v37 }
  0x55   :  { %486 = vmatprep.subr.mxu0 %v624_v0 }
  0x56   :  { %487 = vmatpush3.msra.mxu0 %v261_v38 }
  0x57   :  { %488 = vmatprep.subr.mxu0 %v624_v0 }
  0x58   :  { %489 = vmatpush3.msra.mxu0 %v260_v39 }
  0x59   :  { %490 = vmatprep.subr.mxu0 %v624_v0 }
  0x5a   :  { %491 = vmatpush3.msra.mxu0 %v259_v40 }
  0xf9   :  { %v160_v28 = vpop.f32.mrf.mxu0 }
  0xfa   :  { %v161_v29 = vadd.f32 %v376_v27, %v160_v28 }
  0xfb   :  { %v424_v30 = vpop.f32.mrf.mxu0 }
  0xfc   :  { %v164_v31 = vmax.f32 %v161_v29, 0.0 }
  0xfe   :  { %458 = vmatmul.mubr.f32.vlgmr.msra.gmra.mxu1 %v164_v31 }
 0x1be   :  { %v254_v42 = vpop.f32.mrf.mxu1 }
 0x1bf   :  { %v255_v43 = vadd.f32 %v378_v41, %v254_v42 }
 0x1c0   :  { %v459_v44 = vpop.f32.mrf.mxu1 }
 0x1c1   :  { %504 = vtanh.f32 %v255_v43 }
 0x1ce   :  { %v505_v45 = vpop.eup %504 }
 0x1cf   :  { %493 = vmatmul.mubr.f32.vlgmr.msra.gmra.mxu0 %v505_v45 }
 0x28f   :  { %v348_v47 = vpop.f32.mrf.mxu0 }
 0x290   :  { %v349_v48 = vadd.f32 %v379_v46, %v348_v47 }
 0x291   :  { %v494_v49 = vpop.f32.mrf.mxu0 }
 0x292   :  { %v380_v50 = vmul.f32 -1.442695, %v349_v48 }
 0x294   :  { %506 = vpow2.f32 %v380_v50 }
 0x2a1   :  { %v507_v51 = vpop.eup %506 }
 0x2a2   :  { %v355_v52 = vadd.f32 1.0, %v507_v51 }
 0x2a4   :  { %508 = vrcp.f32 %v355_v52 }
 0x2b1   :  { %v509_v53 = vpop.eup %508 }
 0x2b2   :  { %358 = vst [vmem:[#allocation10] sm:$0xff] %v509_v53 }
 0x2b3   :  { %601 = shalt.err (!%p598_p10)
}
 0x2b4   :  { %368 = dma.vmem_to_hbm [thread:$0]  %s366_s4, 128, %s747_s7, [#allocation4]  }
 0x2b5   :  { %616 = dma.done.wait [#allocation4], 128  }
 0x2b6   :  { %617 = vsyncadd [#allocation4], 4294967168 }
 0x2b7   :  { %372 = vsyncpa [#allocation3], 1 }
 0x2b8   :  { %373 = vsyncpa [#allocation6], 1 }
 0x2b9   :  { %374 = vsyncpa [#allocation9], 1 }
 0x2ba   :  { %375 = vsyncpa [#allocation4], 1 }

</bundles_post_ra>
